<compile_context>
chip_gen: v7x
topology: tpu7x:2x2x1
jax: 0.10.0
libtpu: 0.0.40
codegen_flags: <defaults>
</compile_context>

<pallas_src>
import jax
import jax.numpy as jnp
from jax.experimental import pallas as pl
from jax.experimental.pallas import tpu as pltpu


OBJ_CH = 4                       # objectness channel inside the (5 + nc) prediction vector
_LANES = 128
_MAX_BLOCK_ELEMS = 128 * 1024    # 1024 rows x 128 lanes = 512 KiB f32 per obj block


def _round_up(x, m):
    return ((x + m - 1) // m) * m


# ----------------------------------------------------------------------------
# Shared focal-BCE math (reduced transcendental count; exp(-|x|) reused)
# ----------------------------------------------------------------------------
def _stable_sigmoid_from_exp(x, e):
    # e = exp(-|x|);  sigmoid(x) = where(x>=0, 1, e) / (1 + e)
    return jnp.where(x >= 0.0, 1.0, e) * pl.reciprocal(1.0 + e, approx=True)


def _focal_bce_elems(x, z):
    """Element-wise focal (gamma=1.5, alpha=0.25) BCE-with-logits, pos_weight=1."""
    e = jnp.exp(-jnp.abs(x))
    bce = jnp.maximum(x, 0.0) - x * z + jnp.log1p(e)
    p = _stable_sigmoid_from_exp(x, e)
    p_t = z * p + (1.0 - z) * (1.0 - p)
    alpha_f = z * 0.25 + (1.0 - z) * 0.75
    base = jnp.maximum(1.0 - p_t, 0.0)
    mod = base * jnp.sqrt(base)          # (1 - p_t) ** 1.5 without pow
    return bce * alpha_f * mod


# ----------------------------------------------------------------------------
# Fused multi-scale objectness focal-BCE (mean per scale, summed over scales)
# Lane-dense blocks, scatter-free tobj reconstruction from scalar-prefetched pairs.
# ----------------------------------------------------------------------------
def _make_obj_kernel(metas, blk_elems, blk_rows, nt_pad):
    """metas[s] = (first_block, n_blocks, rows, 1/rows) per scale (static Python)."""

    def kernel(tidx_ref, tbits_ref, x_ref, out_ref):
        g = pl.program_id(0)

        # per-block scale metadata from static constants (scalar unit only)
        w = jnp.float32(0.0)
        nv = jnp.int32(0)
        for (blk0, nblk, rows, inv_rows) in metas:
            in_s = (g >= blk0) & (g < blk0 + nblk)
            w = jnp.where(in_s, jnp.float32(inv_rows), w)
            nv_s = jnp.clip(rows - (g - blk0) * blk_elems, 0, blk_elems)
            nv = jnp.where(in_s, nv_s.astype(jnp.int32), nv)

        x = x_ref[...].astype(jnp.float32)                 # (blk_rows, 128), lane-dense
        ridx = jax.lax.broadcasted_iota(jnp.int32, (blk_rows, _LANES), 0)
        lidx = jax.lax.broadcasted_iota(jnp.int32, (blk_rows, _LANES), 1)
        flat = ridx * _LANES + lidx                        # element index within block
        valid = flat < nv                                  # per-scale ragged tail mask
        gidx = flat + g * blk_elems                        # index in padded concatenation

        # Reconstruct the objectness target plane: max over matched cells (same semantics
        # as the old .at[b,a,gj,gi].max scatter).  Values are clamp(giou,0) >= 0, whose
        # int32 bit patterns are order-preserving, so the max runs in int space and the
        # result is bitcast back once -> only int32 scalars live in SMEM.
        zbits = jnp.zeros((blk_rows, _LANES), jnp.int32)
        for t in range(nt_pad):                            # nt is tiny; unrolled selects
            zbits = jnp.maximum(zbits,
                                jnp.where(gidx == tidx_ref[t], tbits_ref[t], 0))
        z = pltpu.bitcast(zbits, jnp.float32)

        fb = _focal_bce_elems(x, z)
        part = jnp.sum(jnp.where(valid, fb, 0.0)) * w      # static per-scale denominator
        # lane-dense partial-sum block -> safe with "parallel" grid semantics (v7x megacore)
        out_ref[...] = jnp.broadcast_to(part, (8, _LANES)).astype(jnp.float32)

    return kernel


def fused_obj_focal_bce_mean(obj_logits, cell_idx_list, cell_val_list,
                             max_block_elems=_MAX_BLOCK_ELEMS):
    """sum_s mean_over_grid(focal_bce(obj_logits[s], tobj_s))  — one pallas_call.

    obj_logits[s]    : (rows_s,) flat objectness logits of scale s (any float dtype)
    cell_idx_list[s] : (nt,) int32 flat cell index within scale s, or -1 if unmatched
    cell_val_list[s] : (nt,) objectness target value for that cell (>= 0)
    """
    nl = len(obj_logits)
    rows = [int(x.shape[0]) for x in obj_logits]
    blk_elems = min(max_block_elems, _round_up(max(rows), 8 * _LANES))
    blk_rows = blk_elems // _LANES

    metas, chunks, gidx_parts, gval_parts = [], [], [], []
    blk0, off = 0, 0
    for s in range(nl):
        r = rows[s]
        padded = _round_up(r, blk_elems)
        nblk = padded // blk_elems
        metas.append((blk0, nblk, r, 1.0 / float(r)))
        chunks.append(jnp.pad(obj_logits[s].reshape(r), (0, padded - r)))
        ci = cell_idx_list[s].astype(jnp.int32)
        gidx_parts.append(jnp.where(ci >= 0, ci + off, -1))
        gval_parts.append(cell_val_list[s].astype(jnp.float32))
        blk0 += nblk
        off += padded
    total_blocks = blk0

    x_all = jnp.concatenate(chunks).reshape(off // _LANES, _LANES)   # lane-dense slab
    tidx = jnp.concatenate(gidx_parts)
    tval = jnp.concatenate(gval_parts)
    if int(tidx.shape[0]) == 0:
        tidx = jnp.full((1,), -1, jnp.int32)
        tval = jnp.zeros((1,), jnp.float32)
    nt_pad = int(tidx.shape[0])
    tbits = jax.lax.bitcast_convert_type(tval, jnp.int32)            # 32-bit for SMEM

    partials = pl.pallas_call(
        _make_obj_kernel(tuple(metas), blk_elems, blk_rows, nt_pad),
        grid_spec=pltpu.PrefetchScalarGridSpec(
            num_scalar_prefetch=2,
            grid=(total_blocks,),
            in_specs=[pl.BlockSpec((blk_rows, _LANES), lambda g, *_: (g, 0))],
            out_specs=pl.BlockSpec((8, _LANES), lambda g, *_: (g, 0)),
        ),
        out_shape=jax.ShapeDtypeStruct((8 * total_blocks, _LANES), jnp.float32),
        compiler_params=pltpu.CompilerParams(dimension_semantics=("parallel",)),
    )(tidx, tbits, x_all)
    # every (8,128) block holds its partial sum broadcast over 1024 lanes/sublanes
    return jnp.sum(partials) * (1.0 / (8.0 * _LANES))


# ----------------------------------------------------------------------------
# Fused multi-scale classification focal-BCE (masked mean per scale, summed)
# ----------------------------------------------------------------------------
def _make_cls_kernel(nl, nc):
    def kernel(*refs):
        out_ref = refs[3 * nl]
        total = jnp.float32(0.0)
        for s in range(nl):
            x = refs[3 * s][...].astype(jnp.float32)
            z = refs[3 * s + 1][...].astype(jnp.float32)
            m = refs[3 * s + 2][...].astype(jnp.float32)
            fb = _focal_bce_elems(x, z)
            loss_s = jnp.sum(fb * m)               # mask broadcast over classes
            cnt_s = jnp.sum(m) * float(nc)         # denominator accumulated in-kernel
            total = total + jnp.where(cnt_s > 0.0,
                                      loss_s / jnp.maximum(cnt_s, 1.0), 0.0)
        out_ref[0, 0] = total
    return kernel


def fused_cls_focal_bce_mean(xs, zs, ms):
    """sum_s masked-mean(focal_bce(xs[s], zs[s]) * ms[s]) — one tiny whole-array kernel.

    Per-scale arrays are passed as separate whole-array VMEM refs (no concatenate copies,
    no wrapper casts — upcast happens in vregs).
    """
    nl = len(xs)
    nc = int(xs[0].shape[1])
    operands = []
    for x, z, m in zip(xs, zs, ms):
        operands += [x, z, m]
    out = pl.pallas_call(
        _make_cls_kernel(nl, nc),
        out_shape=jax.ShapeDtypeStruct((1, 1), jnp.float32),
        in_specs=[pl.BlockSpec(memory_space=pltpu.MemorySpace.VMEM)] * (3 * nl),
        out_specs=pl.BlockSpec(memory_space=pltpu.MemorySpace.SMEM),
    )(*operands)
    return out[0, 0]


# ----------------------------------------------------------------------------
# GIoU kernel (box decode + GIoU), component-per-plane full-vreg layout.
# Single fused launch over the concatenated targets of all scales.
# ----------------------------------------------------------------------------
def _giou_kernel(p_ref, t_ref, g_ref):
    """p_ref : (6, R, 128) planes tx,ty,tw,th logits + anchor w,h (grid units)
       t_ref : (4, R, 128) planes target cx,cy,w,h (grid units)
       g_ref : (R, 128)    giou output (lane-dense)"""
    def sig(v):
        e = jnp.exp(-jnp.abs(v))
        return _stable_sigmoid_from_exp(v, e)

    px = sig(p_ref[0]) * 2.0 - 0.5
    py = sig(p_ref[1]) * 2.0 - 0.5
    pw = jnp.square(sig(p_ref[2]) * 2.0) * p_ref[4]
    ph = jnp.square(sig(p_ref[3]) * 2.0) * p_ref[5]

    tx, ty, tw, th = t_ref[0], t_ref[1], t_ref[2], t_ref[3]

    b1x1, b1x2 = px - pw * 0.5, px + pw * 0.5
    b1y1, b1y2 = py - ph * 0.5, py + ph * 0.5
    b2x1, b2x2 = tx - tw * 0.5, tx + tw * 0.5
    b2y1, b2y2 = ty - th * 0.5, ty + th * 0.5

    iw = jnp.maximum(jnp.minimum(b1x2, b2x2) - jnp.maximum(b1x1, b2x1), 0.0)
    ih = jnp.maximum(jnp.minimum(b1y2, b2y2) - jnp.maximum(b1y1, b2y1), 0.0)
    inter = iw * ih

    w1, h1 = b1x2 - b1x1, b1y2 - b1y1
    w2, h2 = b2x2 - b2x1, b2y2 - b2y1
    union = w1 * h1 + w2 * h2 - inter + 1e-16
    iou = inter * pl.reciprocal(union, approx=True)

    cw = jnp.maximum(b1x2, b2x2) - jnp.minimum(b1x1, b2x1)
    ch = jnp.maximum(b1y2, b2y2) - jnp.minimum(b1y1, b2y1)
    c_area = cw * ch + 1e-16
    giou = iou - (c_area - union) * pl.reciprocal(c_area, approx=True)

    g_ref[...] = giou


def giou_pallas(ps_xywh, anch_wh, tbox):
    """Per-target GIoU between decoded predictions and targets (one fused launch).

    ps_xywh : (n, 4) raw logits for x, y, w, h     (all scales concatenated)
    anch_wh : (n, 2) matched anchors in grid units
    tbox    : (n, 4) target cx, cy, w, h in grid units
    returns : (n,)  giou
    """
    n = int(ps_xywh.shape[0])
    L = max(1024, _round_up(n, 1024))
    R = L // _LANES

    p6 = jnp.concatenate([ps_xywh.astype(jnp.float32),
                          anch_wh.astype(jnp.float32)], axis=1).T       # (6, n)
    p6 = jnp.pad(p6, ((0, 0), (0, L - n)))
    t4 = jnp.pad(tbox.astype(jnp.float32).T, ((0, 0), (0, L - n)))

    g = pl.pallas_call(
        _giou_kernel,
        out_shape=jax.ShapeDtypeStruct((R, _LANES), jnp.float32),
        in_specs=[pl.BlockSpec(memory_space=pltpu.MemorySpace.VMEM)] * 2,
        out_specs=pl.BlockSpec(memory_space=pltpu.MemorySpace.VMEM),
    )(p6.reshape(6, R, _LANES), t4.reshape(4, R, _LANES))
    return g.reshape(-1)[:n]


# ----------------------------------------------------------------------------
# Multi-scale detection loss (JAX / Pallas)
# ----------------------------------------------------------------------------
class MultiScaleRegionLossV5:
    def __init__(self, anchors, num_classes, img_dim=64):
        self.stride = jnp.array([8.0, 16.0, 32.0], jnp.float32)
        self.nc = num_classes
        self.nl = len(anchors)
        self.na = len(anchors[0]) // 2
        anchor_grid = jnp.asarray(anchors, jnp.float32).reshape(self.nl, self.na, 2)
        self.anchors = anchor_grid / self.stride.reshape(-1, 1, 1)  # grid units per scale
        # smooth_BCE(eps=0.0)
        self.cp, self.cn = 1.0, 0.0

    def _build_targets_scale(self, targets, anchors_i, H, W, B):
        # Simplified fixed-shape YOLOv5-style matcher (best wh-ratio anchor per target,
        # ratio<4, no 0.5-offset neighbour-cell expansion), validity mask instead of
        # dynamic boolean indexing.  (Same as the previously-accepted version.)
        img = jnp.clip(targets[:, 0].astype(jnp.int32), 0, B - 1)
        cls = jnp.clip(targets[:, 1].astype(jnp.int32), 0, self.nc - 1)
        gain = jnp.array([W, H], jnp.float32)
        gxy = targets[:, 2:4] * gain
        gwh = targets[:, 4:6] * gain
        r = gwh[:, None, :] / anchors_i[None, :, :]
        ratio = jnp.maximum(r, 1.0 / r).max(-1)            # (nt, na)
        a = jnp.argmin(ratio, axis=-1).astype(jnp.int32)   # best anchor per target
        valid = ratio.min(-1) < 4.0
        gij = jnp.floor(gxy)
        gi = jnp.clip(gij[:, 0].astype(jnp.int32), 0, W - 1)
        gj = jnp.clip(gij[:, 1].astype(jnp.int32), 0, H - 1)
        tbox = jnp.concatenate([gxy - gij, gwh], axis=1)
        anch = anchors_i[a]
        return cls, tbox, (img, a, gj, gi), anch, valid

    def __call__(self, outputs, targets):
        nl = len(outputs)
        ps_box, anchs, tboxes, vfs, cell_idx, obj_logits = [], [], [], [], [], []
        cls_x, cls_z, cls_m = [], [], []

        for i, pi in enumerate(outputs):
            B, na, H, W, no = pi.shape
            tcls, tbox, (b, a, gj, gi), anch, valid = self._build_targets_scale(
                targets, self.anchors[i], H, W, B)
            vf = valid.astype(jnp.float32)

            ps = pi[b, a, gj, gi]                           # (nt, 5+nc) gather (XLA glue)
            ps_box.append(ps[:, :4])
            anchs.append(anch)
            tboxes.append(tbox)
            vfs.append(vf)

            # flat index of the matched cell in this scale's (B*na*H*W,) obj plane
            flat_cell = ((b * na + a) * H + gj) * W + gi
            cell_idx.append(jnp.where(valid, flat_cell, -1))

            # lane-dense obj logits: contiguous channel slice + ravel (no (rows,5+nc) slab)
            obj_logits.append(pi[..., OBJ_CH].reshape(B * na * H * W))

            if self.nc > 1:
                ntg = tcls.shape[0]
                t = jnp.full((ntg, self.nc), self.cn, jnp.float32)
                t = t.at[jnp.arange(ntg), tcls].set(self.cp)
                cls_x.append(ps[:, 5:])
                cls_z.append(t)
                cls_m.append(vf[:, None])

        # box loss (GIoU) — one fused kernel launch over all scales' matched targets
        ntg = int(ps_box[0].shape[0])
        giou_all = giou_pallas(jnp.concatenate(ps_box, axis=0),
                               jnp.concatenate(anchs, axis=0),
                               jnp.concatenate(tboxes, axis=0)).reshape(nl, ntg)

        lbox = jnp.float32(0.0)
        cell_val = []
        for s in range(nl):
            giou_s = giou_all[s]
            vf = vfs[s]
            nb = vf.sum()
            lbox = lbox + jnp.where(
                nb > 0, jnp.sum((1.0 - giou_s) * vf) / jnp.maximum(nb, 1.0), 0.0)
            # objectness target value for the matched cell: clamp(giou, 0)
            cell_val.append(jnp.where(vf > 0, jnp.maximum(giou_s, 0.0), 0.0))

        # objectness loss over the full grids — single fused lane-dense focal-BCE kernel,
        # tobj reconstructed in-kernel from the (idx, val) pairs (no full-grid scatter).
        lobj = fused_obj_focal_bce_mean(obj_logits, cell_idx, cell_val)

        # classification loss over matched predictions — single fused focal-BCE kernel
        if self.nc > 1:
            lcls = fused_cls_focal_bce_mean(cls_x, cls_z, cls_m)
        else:
            lcls = jnp.float32(0.0)

        lbox = lbox * 0.05
        lobj = lobj * 1.0
        lcls = lcls * 0.58
        loss = lbox + lobj + lcls
        return {"loss": loss, "Localization": lbox, "Classification": lcls, "Conf_obj": lobj}


# ----------------------------------------------------------------------------
# Example
# ----------------------------------------------------------------------------
if __name__ == "__main__":
    key = jax.random.PRNGKey(0)
    B, nc, img_dim = 2, 4, 64
    anchors = [[10, 13, 16, 30, 33, 23],
               [30, 61, 62, 45, 59, 119],
               [116, 90, 156, 198, 373, 326]]

    loss_mod = MultiScaleRegionLossV5(anchors, nc, img_dim)

    outputs = []
    for s in (8, 16, 32):
        key, sub = jax.random.split(key)
        g = img_dim // s
        outputs.append(0.1 * jax.random.normal(sub, (B, 3, g, g, 5 + nc), jnp.float32))

    # targets: (nt, 6) = [image_idx, class, cx, cy, w, h] (normalized 0..1)
    targets = jnp.array([
        [0, 1, 0.30, 0.40, 0.20, 0.30],
        [0, 2, 0.70, 0.60, 0.10, 0.20],
        [1, 0, 0.50, 0.50, 0.40, 0.50],
        [1, 3, 0.25, 0.75, 0.15, 0.10],
    ], jnp.float32)

    metrics = loss_mod(outputs, targets)
    jax.block_until_ready(metrics["loss"])
    print("KERNEL_OK")
</pallas_src>

<mosaic_0001>
module attributes {stable_mosaic.version = 11 : i64} {
  func.func @_giou_kernel(%arg0: memref<6x8x128xf32, #tpu.memory_space<vmem>>, %arg1: memref<4x8x128xf32, #tpu.memory_space<vmem>>, %arg2: memref<8x128xf32, #tpu.memory_space<vmem>>) attributes {dimension_semantics = [], scalar_prefetch = 0 : i64, scratch_operands = 0 : i64, tpu.core_type = #tpu.core_type<tc>} {
    %c0 = arith.constant 0 : index
    %c0_0 = arith.constant 0 : index
    %c0_1 = arith.constant 0 : index
    %0 = vector.load %arg0[%c0, %c0_0, %c0_1] : memref<6x8x128xf32, #tpu.memory_space<vmem>>, vector<1x8x128xf32>
    %1 = vector.shape_cast %0 : vector<1x8x128xf32> to vector<8x128xf32>
    %2 = math.absf %1 : vector<8x128xf32>
    %cst = arith.constant 0.000000e+00 : f32
    %3 = vector.broadcast %cst : f32 to vector<8x128xf32>
    %4 = arith.subf %3, %2 : vector<8x128xf32>
    %5 = math.exp %4 : vector<8x128xf32>
    %cst_2 = arith.constant 0.000000e+00 : f32
    %6 = vector.broadcast %cst_2 : f32 to vector<8x128xf32>
    %7 = arith.cmpf oge, %1, %6 : vector<8x128xf32>
    %cst_3 = arith.constant 1.000000e+00 : f32
    %8 = vector.broadcast %cst_3 : f32 to vector<8x128xf32>
    %9 = arith.select %7, %8, %5 : vector<8x128xi1>, vector<8x128xf32>
    %cst_4 = arith.constant 1.000000e+00 : f32
    %10 = vector.broadcast %cst_4 : f32 to vector<8x128xf32>
    %11 = arith.addf %10, %5 : vector<8x128xf32>
    %12 = tpu.reciprocal %11 {approx = true} : vector<8x128xf32> -> vector<8x128xf32>
    %13 = arith.mulf %9, %12 : vector<8x128xf32>
    %cst_5 = arith.constant 2.000000e+00 : f32
    %14 = vector.broadcast %cst_5 : f32 to vector<8x128xf32>
    %15 = arith.mulf %13, %14 : vector<8x128xf32>
    %cst_6 = arith.constant 5.000000e-01 : f32
    %16 = vector.broadcast %cst_6 : f32 to vector<8x128xf32>
    %17 = arith.subf %15, %16 : vector<8x128xf32>
    %c1 = arith.constant 1 : index
    %c0_7 = arith.constant 0 : index
    %c0_8 = arith.constant 0 : index
    %18 = vector.load %arg0[%c1, %c0_7, %c0_8] : memref<6x8x128xf32, #tpu.memory_space<vmem>>, vector<1x8x128xf32>
    %19 = vector.shape_cast %18 : vector<1x8x128xf32> to vector<8x128xf32>
    %20 = math.absf %19 : vector<8x128xf32>
    %cst_9 = arith.constant 0.000000e+00 : f32
    %21 = vector.broadcast %cst_9 : f32 to vector<8x128xf32>
    %22 = arith.subf %21, %20 : vector<8x128xf32>
    %23 = math.exp %22 : vector<8x128xf32>
    %cst_10 = arith.constant 0.000000e+00 : f32
    %24 = vector.broadcast %cst_10 : f32 to vector<8x128xf32>
    %25 = arith.cmpf oge, %19, %24 : vector<8x128xf32>
    %cst_11 = arith.constant 1.000000e+00 : f32
    %26 = vector.broadcast %cst_11 : f32 to vector<8x128xf32>
    %27 = arith.select %25, %26, %23 : vector<8x128xi1>, vector<8x128xf32>
    %cst_12 = arith.constant 1.000000e+00 : f32
    %28 = vector.broadcast %cst_12 : f32 to vector<8x128xf32>
    %29 = arith.addf %28, %23 : vector<8x128xf32>
    %30 = tpu.reciprocal %29 {approx = true} : vector<8x128xf32> -> vector<8x128xf32>
    %31 = arith.mulf %27, %30 : vector<8x128xf32>
    %cst_13 = arith.constant 2.000000e+00 : f32
    %32 = vector.broadcast %cst_13 : f32 to vector<8x128xf32>
    %33 = arith.mulf %31, %32 : vector<8x128xf32>
    %cst_14 = arith.constant 5.000000e-01 : f32
    %34 = vector.broadcast %cst_14 : f32 to vector<8x128xf32>
    %35 = arith.subf %33, %34 : vector<8x128xf32>
    %c2 = arith.constant 2 : index
    %c0_15 = arith.constant 0 : index
    %c0_16 = arith.constant 0 : index
    %36 = vector.load %arg0[%c2, %c0_15, %c0_16] : memref<6x8x128xf32, #tpu.memory_space<vmem>>, vector<1x8x128xf32>
    %37 = vector.shape_cast %36 : vector<1x8x128xf32> to vector<8x128xf32>
    %38 = math.absf %37 : vector<8x128xf32>
    %cst_17 = arith.constant 0.000000e+00 : f32
    %39 = vector.broadcast %cst_17 : f32 to vector<8x128xf32>
    %40 = arith.subf %39, %38 : vector<8x128xf32>
    %41 = math.exp %40 : vector<8x128xf32>
    %cst_18 = arith.constant 0.000000e+00 : f32
    %42 = vector.broadcast %cst_18 : f32 to vector<8x128xf32>
    %43 = arith.cmpf oge, %37, %42 : vector<8x128xf32>
    %cst_19 = arith.constant 1.000000e+00 : f32
    %44 = vector.broadcast %cst_19 : f32 to vector<8x128xf32>
    %45 = arith.select %43, %44, %41 : vector<8x128xi1>, vector<8x128xf32>
    %cst_20 = arith.constant 1.000000e+00 : f32
    %46 = vector.broadcast %cst_20 : f32 to vector<8x128xf32>
    %47 = arith.addf %46, %41 : vector<8x128xf32>
    %48 = tpu.reciprocal %47 {approx = true} : vector<8x128xf32> -> vector<8x128xf32>
    %49 = arith.mulf %45, %48 : vector<8x128xf32>
    %cst_21 = arith.constant 2.000000e+00 : f32
    %50 = vector.broadcast %cst_21 : f32 to vector<8x128xf32>
    %51 = arith.mulf %49, %50 : vector<8x128xf32>
    %52 = arith.mulf %51, %51 : vector<8x128xf32>
    %c4 = arith.constant 4 : index
    %c0_22 = arith.constant 0 : index
    %c0_23 = arith.constant 0 : index
    %53 = vector.load %arg0[%c4, %c0_22, %c0_23] : memref<6x8x128xf32, #tpu.memory_space<vmem>>, vector<1x8x128xf32>
    %54 = vector.shape_cast %53 : vector<1x8x128xf32> to vector<8x128xf32>
    %55 = arith.mulf %52, %54 : vector<8x128xf32>
    %c3 = arith.constant 3 : index
    %c0_24 = arith.constant 0 : index
    %c0_25 = arith.constant 0 : index
    %56 = vector.load %arg0[%c3, %c0_24, %c0_25] : memref<6x8x128xf32, #tpu.memory_space<vmem>>, vector<1x8x128xf32>
    %57 = vector.shape_cast %56 : vector<1x8x128xf32> to vector<8x128xf32>
    %58 = math.absf %57 : vector<8x128xf32>
    %cst_26 = arith.constant 0.000000e+00 : f32
    %59 = vector.broadcast %cst_26 : f32 to vector<8x128xf32>
    %60 = arith.subf %59, %58 : vector<8x128xf32>
    %61 = math.exp %60 : vector<8x128xf32>
    %cst_27 = arith.constant 0.000000e+00 : f32
    %62 = vector.broadcast %cst_27 : f32 to vector<8x128xf32>
    %63 = arith.cmpf oge, %57, %62 : vector<8x128xf32>
    %cst_28 = arith.constant 1.000000e+00 : f32
    %64 = vector.broadcast %cst_28 : f32 to vector<8x128xf32>
    %65 = arith.select %63, %64, %61 : vector<8x128xi1>, vector<8x128xf32>
    %cst_29 = arith.constant 1.000000e+00 : f32
    %66 = vector.broadcast %cst_29 : f32 to vector<8x128xf32>
    %67 = arith.addf %66, %61 : vector<8x128xf32>
    %68 = tpu.reciprocal %67 {approx = true} : vector<8x128xf32> -> vector<8x128xf32>
    %69 = arith.mulf %65, %68 : vector<8x128xf32>
    %cst_30 = arith.constant 2.000000e+00 : f32
    %70 = vector.broadcast %cst_30 : f32 to vector<8x128xf32>
    %71 = arith.mulf %69, %70 : vector<8x128xf32>
    %72 = arith.mulf %71, %71 : vector<8x128xf32>
    %c5 = arith.constant 5 : index
    %c0_31 = arith.constant 0 : index
    %c0_32 = arith.constant 0 : index
    %73 = vector.load %arg0[%c5, %c0_31, %c0_32] : memref<6x8x128xf32, #tpu.memory_space<vmem>>, vector<1x8x128xf32>
    %74 = vector.shape_cast %73 : vector<1x8x128xf32> to vector<8x128xf32>
    %75 = arith.mulf %72, %74 : vector<8x128xf32>
    %c0_33 = arith.constant 0 : index
    %c0_34 = arith.constant 0 : index
    %c0_35 = arith.constant 0 : index
    %76 = vector.load %arg1[%c0_33, %c0_34, %c0_35] : memref<4x8x128xf32, #tpu.memory_space<vmem>>, vector<1x8x128xf32>
    %77 = vector.shape_cast %76 : vector<1x8x128xf32> to vector<8x128xf32>
    %c1_36 = arith.constant 1 : index
    %c0_37 = arith.constant 0 : index
    %c0_38 = arith.constant 0 : index
    %78 = vector.load %arg1[%c1_36, %c0_37, %c0_38] : memref<4x8x128xf32, #tpu.memory_space<vmem>>, vector<1x8x128xf32>
    %79 = vector.shape_cast %78 : vector<1x8x128xf32> to vector<8x128xf32>
    %c2_39 = arith.constant 2 : index
    %c0_40 = arith.constant 0 : index
    %c0_41 = arith.constant 0 : index
    %80 = vector.load %arg1[%c2_39, %c0_40, %c0_41] : memref<4x8x128xf32, #tpu.memory_space<vmem>>, vector<1x8x128xf32>
    %81 = vector.shape_cast %80 : vector<1x8x128xf32> to vector<8x128xf32>
    %c3_42 = arith.constant 3 : index
    %c0_43 = arith.constant 0 : index
    %c0_44 = arith.constant 0 : index
    %82 = vector.load %arg1[%c3_42, %c0_43, %c0_44] : memref<4x8x128xf32, #tpu.memory_space<vmem>>, vector<1x8x128xf32>
    %83 = vector.shape_cast %82 : vector<1x8x128xf32> to vector<8x128xf32>
    %cst_45 = arith.constant 5.000000e-01 : f32
    %84 = vector.broadcast %cst_45 : f32 to vector<8x128xf32>
    %85 = arith.mulf %55, %84 : vector<8x128xf32>
    %86 = arith.subf %17, %85 : vector<8x128xf32>
    %cst_46 = arith.constant 5.000000e-01 : f32
    %87 = vector.broadcast %cst_46 : f32 to vector<8x128xf32>
    %88 = arith.mulf %55, %87 : vector<8x128xf32>
    %89 = arith.addf %17, %88 : vector<8x128xf32>
    %cst_47 = arith.constant 5.000000e-01 : f32
    %90 = vector.broadcast %cst_47 : f32 to vector<8x128xf32>
    %91 = arith.mulf %75, %90 : vector<8x128xf32>
    %92 = arith.subf %35, %91 : vector<8x128xf32>
    %cst_48 = arith.constant 5.000000e-01 : f32
    %93 = vector.broadcast %cst_48 : f32 to vector<8x128xf32>
    %94 = arith.mulf %75, %93 : vector<8x128xf32>
    %95 = arith.addf %35, %94 : vector<8x128xf32>
    %cst_49 = arith.constant 5.000000e-01 : f32
    %96 = vector.broadcast %cst_49 : f32 to vector<8x128xf32>
    %97 = arith.mulf %81, %96 : vector<8x128xf32>
    %98 = arith.subf %77, %97 : vector<8x128xf32>
    %cst_50 = arith.constant 5.000000e-01 : f32
    %99 = vector.broadcast %cst_50 : f32 to vector<8x128xf32>
    %100 = arith.mulf %81, %99 : vector<8x128xf32>
    %101 = arith.addf %77, %100 : vector<8x128xf32>
    %cst_51 = arith.constant 5.000000e-01 : f32
    %102 = vector.broadcast %cst_51 : f32 to vector<8x128xf32>
    %103 = arith.mulf %83, %102 : vector<8x128xf32>
    %104 = arith.subf %79, %103 : vector<8x128xf32>
    %cst_52 = arith.constant 5.000000e-01 : f32
    %105 = vector.broadcast %cst_52 : f32 to vector<8x128xf32>
    %106 = arith.mulf %83, %105 : vector<8x128xf32>
    %107 = arith.addf %79, %106 : vector<8x128xf32>
    %108 = arith.minimumf %89, %101 : vector<8x128xf32>
    %109 = arith.maximumf %86, %98 : vector<8x128xf32>
    %110 = arith.subf %108, %109 : vector<8x128xf32>
    %cst_53 = arith.constant 0.000000e+00 : f32
    %111 = vector.broadcast %cst_53 : f32 to vector<8x128xf32>
    %112 = arith.maximumf %110, %111 : vector<8x128xf32>
    %113 = arith.minimumf %95, %107 : vector<8x128xf32>
    %114 = arith.maximumf %92, %104 : vector<8x128xf32>
    %115 = arith.subf %113, %114 : vector<8x128xf32>
    %cst_54 = arith.constant 0.000000e+00 : f32
    %116 = vector.broadcast %cst_54 : f32 to vector<8x128xf32>
    %117 = arith.maximumf %115, %116 : vector<8x128xf32>
    %118 = arith.mulf %112, %117 : vector<8x128xf32>
    %119 = arith.subf %89, %86 : vector<8x128xf32>
    %120 = arith.subf %95, %92 : vector<8x128xf32>
    %121 = arith.subf %101, %98 : vector<8x128xf32>
    %122 = arith.subf %107, %104 : vector<8x128xf32>
    %123 = arith.mulf %119, %120 : vector<8x128xf32>
    %124 = arith.mulf %121, %122 : vector<8x128xf32>
    %125 = arith.addf %123, %124 : vector<8x128xf32>
    %126 = arith.subf %125, %118 : vector<8x128xf32>
    %cst_55 = arith.constant 1.000000e-16 : f32
    %127 = vector.broadcast %cst_55 : f32 to vector<8x128xf32>
    %128 = arith.addf %126, %127 : vector<8x128xf32>
    %129 = tpu.reciprocal %128 {approx = true} : vector<8x128xf32> -> vector<8x128xf32>
    %130 = arith.mulf %118, %129 : vector<8x128xf32>
    %131 = arith.maximumf %89, %101 : vector<8x128xf32>
    %132 = arith.minimumf %86, %98 : vector<8x128xf32>
    %133 = arith.subf %131, %132 : vector<8x128xf32>
    %134 = arith.maximumf %95, %107 : vector<8x128xf32>
    %135 = arith.minimumf %92, %104 : vector<8x128xf32>
    %136 = arith.subf %134, %135 : vector<8x128xf32>
    %137 = arith.mulf %133, %136 : vector<8x128xf32>
    %cst_56 = arith.constant 1.000000e-16 : f32
    %138 = vector.broadcast %cst_56 : f32 to vector<8x128xf32>
    %139 = arith.addf %137, %138 : vector<8x128xf32>
    %140 = arith.subf %139, %128 : vector<8x128xf32>
    %141 = tpu.reciprocal %139 {approx = true} : vector<8x128xf32> -> vector<8x128xf32>
    %142 = arith.mulf %140, %141 : vector<8x128xf32>
    %143 = arith.subf %130, %142 : vector<8x128xf32>
    %c0_57 = arith.constant 0 : index
    %c0_58 = arith.constant 0 : index
    %144 = vector.load %arg2[%c0_57, %c0_58] : memref<8x128xf32, #tpu.memory_space<vmem>>, vector<8x128xf32>
    tpu.vector_store %arg2[%c0_57, %c0_58], %143 {strides = array<i32>} : memref<8x128xf32, #tpu.memory_space<vmem>>, vector<8x128xf32>,
    return
  }
}

</mosaic_0001>

<bundles_post_ra>
// kernel: tpu_custom_call.1
= control target key start
LH: loop header
LB: loop body
LE: loop exit
PB: predicated region body
PF: predicated region fallthrough
CT: control target
= control target key end

     0   :  { %7 = vsyncpa [#allocation3], 0  ;;  %s320_s0 = inlined_call_operand.hbm [shape: f32[6,8,128], index: 0, kind: input, shape index: {}]   ;;  %s321_s1 = inlined_call_operand.hbm [shape: f32[4,8,128], index: 1, kind: input, shape index: {}]   ;;  %s322_s2 = inlined_call_operand.hbm [shape: f32[8,128], index: 2, kind: output, shape index: {}]  }
   0x1   :  { %8 = vsyncpa [#allocation6], 0 }
   0x2   :  { %9 = vsyncpa [#allocation4], 0  ;;  %s264_s9 = smov [#allocation2]   ;;  %s192_s13 = scalar_lea.hbm %s320_s0, 768 }
   0x3   :  { %s15_s10 = sshll.u32 %s264_s9, 4  ;;  %p193_p0 = scmp.ne.s32.totalorder %s320_s0, %s192_s13  ;;  %s16_s10 = int_to_ptr.vmem [resolvable:$true] %s15_s10 }
   0x4   :  { %p196_p1 = scmp.lt.u32.totalorder %s192_s13, %s320_s0 }
   0x6   :  { %p198_p2 = pnand %p196_p1, %p193_p0 }
   0x8   :  { %201 = shalt.err (!%p198_p2)
}
   0x9   :  { %s202_s18 = scalar_lea.vmem %s16_s10, 768  ;;  %p207_p4 = scmp.lt.s32.totalorder %s16_s10, %s16_s10 }
   0xa   :  { %p203_p3 = scmp.ne.s32.totalorder %s16_s10, %s202_s18  ;;  %p208_p5 = scmp.lt.s32.totalorder %s202_s18, %s202_s18 }
   0xc   :  { %p209_p6 = por %p208_p5, %p207_p4 }
   0xe   :  { %p210_p7 = pnand %p209_p6, %p203_p3 }
  0x10   :  { %213 = shalt.err (!%p210_p7)
}
  0x11   :  { %s265_s19 = smov 128   ;;  %s266_s20 = smov 8  }
  0x12   :  { %21 = dma.hbm_to_vmem [thread:$0]  %s320_s0, 768, %s16_s10, [#allocation3], %s265_s19, %s265_s19, %s266_s20  }
  0x13   :  { %s267_s23 = smov [#allocation5]   ;;  %s214_s27 = scalar_lea.hbm %s321_s1, 512 }
  0x14   :  { %s27_s24 = sshll.u32 %s267_s23, 4  ;;  %p215_p8 = scmp.ne.s32.totalorder %s321_s1, %s214_s27  ;;  %s28_s24 = int_to_ptr.vmem [resolvable:$true] %s27_s24 }
  0x15   :  { %p218_p9 = scmp.lt.u32.totalorder %s214_s27, %s321_s1 }
  0x17   :  { %p220_p10 = pnand %p218_p9, %p215_p8 }
  0x19   :  { %223 = shalt.err (!%p220_p10)
}
  0x1a   :  { %s224_s4 = scalar_lea.vmem %s28_s24, 512  ;;  %p229_p12 = scmp.lt.s32.totalorder %s28_s24, %s28_s24 }
  0x1b   :  { %p225_p11 = scmp.ne.s32.totalorder %s28_s24, %s224_s4  ;;  %p230_p13 = scmp.lt.s32.totalorder %s224_s4, %s224_s4 }
  0x1d   :  { %p231_p0 = por %p230_p13, %p229_p12 }
  0x1f   :  { %p232_p1 = pnand %p231_p0, %p225_p11 }
  0x21   :  { %235 = shalt.err (!%p232_p1)
}
  0x22   :  { %33 = dma.hbm_to_vmem [thread:$0]  %s321_s1, 512, %s28_s24, [#allocation6], %s265_s19, %s265_s19, %s266_s20  }
  0x23   :  { %258 = dma.done.wait [#allocation3], 768  }
  0x24   :  { %259 = vsyncadd [#allocation3], 4294966528 }
  0x25   :  { %260 = dma.done.wait [#allocation6], 512  }
  0x26   :  { %261 = vsyncadd [#allocation6], 4294966784  ;;  %v40_v0 = vld [vmem:[#allocation2] sm:$0xff]  ;;  %v53_v1 = vld [vmem:[#allocation2 + $0x8] sm:$0xff]  ;;  %s268_s1 = smov [#allocation7]  }
  0x27   :  { %v66_v2 = vld [vmem:[#allocation2 + $0x10] sm:$0xff]  ;;  %v41_v3 = vand.u32 2147483647, %v40_v0  ;;  %v54_v4 = vand.u32 2147483647, %v53_v1  ;;  %v82_v6 = vld [vmem:[#allocation2 + $0x18] sm:$0xff] }
  0x28   :  { %v67_v5 = vand.u32 2147483647, %v66_v2  ;;  %v83_v9 = vand.u32 2147483647, %v82_v6  ;;  %vm45_vm0 = vcmp.ge.f32.partialorder %v40_v0, 0.0  ;;  %vm58_vm1 = vcmp.ge.f32.partialorder %v53_v1, 0.0 }
  0x29   :  { %v42_v7 = vsub.f32 0.0, %v41_v3  ;;  %v55_v8 = vsub.f32 0.0, %v54_v4  ;;  %vm71_vm2 = vcmp.ge.f32.partialorder %v66_v2, 0.0  ;;  %vm87_vm3 = vcmp.ge.f32.partialorder %v82_v6, 0.0  ;;  %v101_v28 = vld [vmem:[#allocation5 + $0x10] sm:$0xff]  ;;  %v103_v32 = vld [vmem:[#allocation5 + $0x18] sm:$0xff] }
  0x2a   :  { %v68_v10 = vsub.f32 0.0, %v67_v5  ;;  %v84_v13 = vsub.f32 0.0, %v83_v9  ;;  %v110_v37 = vmul.f32 0.5, %v101_v28  ;;  %v97_v39 = vld [vmem:[#allocation5] sm:$0xff]  ;;  %v113_v40 = vmul.f32 0.5, %v103_v32  ;;  %v99_v43 = vld [vmem:[#allocation5 + $0x8] sm:$0xff] }
  0x2b   :  { %v43_v11 = vmul.f32 1.442695, %v42_v7  ;;  %v56_v12 = vmul.f32 1.442695, %v55_v8  ;;  %v79_v45 = vld [vmem:[#allocation2 + $0x20] sm:$0xff]  ;;  %v95_v48 = vld [vmem:[#allocation2 + $0x28] sm:$0xff] }
  0x2c   :  { %v69_v14 = vmul.f32 1.442695, %v68_v10  ;;  %v85_v15 = vmul.f32 1.442695, %v84_v13  ;;  %v111_v49 = vsub.f32 %v97_v39, %v110_v37  ;;  %v112_v51 = vadd.f32 %v110_v37, %v97_v39  ;;  %s155_s6 = sshll.u32 %s268_s1, 4  ;;  %s156_s6 = int_to_ptr.vmem [resolvable:$true] %s155_s6 }
  0x2d   :  { %172 = vpow2.f32 %v43_v11  ;;  %v114_v52 = vsub.f32 %v99_v43, %v113_v40  ;;  %v115_v53 = vadd.f32 %v113_v40, %v99_v43  ;;  %s236_s7 = scalar_lea.vmem %s156_s6, 128  ;;  %p241_p3 = scmp.lt.s32.totalorder %s156_s6, %s156_s6 }
  0x2e   :  { %174 = vpow2.f32 %v56_v12  ;;  %v127_v58 = vsub.f32 %v112_v51, %v111_v49  ;;  %p237_p2 = scmp.ne.s32.totalorder %s156_s6, %s236_s7  ;;  %p242_p4 = scmp.lt.s32.totalorder %s236_s7, %s236_s7 }
  0x2f   :  { %176 = vpow2.f32 %v69_v14  ;;  %v128_v59 = vsub.f32 %v115_v53, %v114_v52 }
  0x30   :  { %178 = vpow2.f32 %v85_v15  ;;  %p243_p5 = por %p242_p4, %p241_p3 }
  0x31   :  { %v130_v2 = vmul.f32 %v128_v59, %v127_v58 }
  0x32   :  { %p244_p6 = pnand %p243_p5, %p237_p2 }
  0x37   :  { %v173_v16 = vpop.eup %172 }
  0x38   :  { %v175_v17 = vpop.eup %174  ;;  %v47_v18 = vadd.f32 1.0, %v173_v16  ;;  %v46_v24 = vsel %vm45_vm0, 1.0, %v173_v16 }
  0x39   :  { %v177_v19 = vpop.eup %176  ;;  %v60_v20 = vadd.f32 1.0, %v175_v17  ;;  %v59_v25 = vsel %vm58_vm1, 1.0, %v175_v17 }
  0x3a   :  { %v179_v21 = vpop.eup %178  ;;  %180 = vrcp.f32 %v47_v18  ;;  %v73_v22 = vadd.f32 1.0, %v177_v19  ;;  %v72_v27 = vsel %vm71_vm2, 1.0, %v177_v19 }
  0x3b   :  { %182 = vrcp.f32 %v60_v20  ;;  %v89_v23 = vadd.f32 1.0, %v179_v21  ;;  %v88_v31 = vsel %vm87_vm3, 1.0, %v179_v21 }
  0x3c   :  { %184 = vrcp.f32 %v73_v22 }
  0x3d   :  { %186 = vrcp.f32 %v89_v23 }
  0x44   :  { %v181_v26 = vpop.eup %180 }
  0x45   :  { %v183_v29 = vpop.eup %182  ;;  %v49_v30 = vmul.f32 %v181_v26, %v46_v24 }
  0x46   :  { %v185_v33 = vpop.eup %184  ;;  %v62_v34 = vmul.f32 %v183_v29, %v59_v25 }
  0x47   :  { %v187_v35 = vpop.eup %186  ;;  %v75_v36 = vmul.f32 %v185_v33, %v72_v27  ;;  %v50_v41 = vmul.f32 2.0, %v49_v30 }
  0x48   :  { %v91_v38 = vmul.f32 %v187_v35, %v88_v31  ;;  %v63_v44 = vmul.f32 2.0, %v62_v34 }
  0x49   :  { %v76_v42 = vmul.f32 2.0, %v75_v36  ;;  %v165_v54 = vadd.f32 -0.5, %v50_v41 }
  0x4a   :  { %v92_v46 = vmul.f32 2.0, %v91_v38  ;;  %v166_v56 = vadd.f32 -0.5, %v63_v44 }
  0x4b   :  { %v77_v47 = vmul.f32 %v76_v42, %v76_v42 }
  0x4c   :  { %v93_v50 = vmul.f32 %v92_v46, %v92_v46 }
  0x4d   :  { %v80_v55 = vmul.f32 %v79_v45, %v77_v47 }
  0x4e   :  { %v96_v57 = vmul.f32 %v95_v48, %v93_v50 }
  0x4f   :  { %v104_v60 = vmul.f32 0.5, %v80_v55 }
  0x50   :  { %v107_v61 = vmul.f32 0.5, %v96_v57 }
  0x51   :  { %v105_v62 = vsub.f32 %v165_v54, %v104_v60  ;;  %v106_v63 = vadd.f32 %v165_v54, %v104_v60 }
  0x52   :  { %v108_v0 = vsub.f32 %v166_v56, %v107_v61  ;;  %v109_v1 = vadd.f32 %v166_v56, %v107_v61 }
  0x53   :  { %v116_v3 = vmin.f32 %v106_v63, %v112_v51  ;;  %v117_v4 = vmax.f32 %v105_v62, %v111_v49  ;;  %v125_v5 = vsub.f32 %v106_v63, %v105_v62  ;;  %v136_v6 = vmax.f32 %v106_v63, %v112_v51 }
  0x54   :  { %v120_v7 = vmin.f32 %v109_v1, %v115_v53  ;;  %v121_v8 = vmax.f32 %v108_v0, %v114_v52  ;;  %v126_v9 = vsub.f32 %v109_v1, %v108_v0  ;;  %v137_v10 = vmin.f32 %v105_v62, %v111_v49 }
  0x55   :  { %v118_v11 = vsub.f32 %v116_v3, %v117_v4  ;;  %v139_v12 = vmax.f32 %v109_v1, %v115_v53  ;;  %v140_v13 = vmin.f32 %v108_v0, %v114_v52 }
  0x56   :  { %v122_v14 = vsub.f32 %v120_v7, %v121_v8  ;;  %v129_v15 = vmul.f32 %v126_v9, %v125_v5  ;;  %v138_v16 = vsub.f32 %v136_v6, %v137_v10 }
  0x57   :  { %v119_v17 = vmax.f32 %v118_v11, 0.0  ;;  %v141_v18 = vsub.f32 %v139_v12, %v140_v13 }
  0x58   :  { %v123_v19 = vmax.f32 %v122_v14, 0.0  ;;  %v131_v20 = vadd.f32 %v130_v2, %v129_v15 }
  0x59   :  { %v142_v21 = vmul.f32 %v141_v18, %v138_v16 }
  0x5a   :  { %v124_v22 = vmul.f32 %v123_v19, %v119_v17 }
  0x5b   :  { %v143_v23 = vadd.f32 1e-16, %v142_v21 }
  0x5c   :  { %v132_v24 = vsub.f32 %v131_v20, %v124_v22 }
  0x5d   :  { %188 = vrcp.f32 %v143_v23 }
  0x5e   :  { %v133_v25 = vadd.f32 1e-16, %v132_v24 }
  0x60   :  { %190 = vrcp.f32 %v133_v25  ;;  %v144_v26 = vsub.f32 %v143_v23, %v133_v25 }
  0x67   :  { %v189_v27 = vpop.eup %188 }
  0x68   :  { %v146_v28 = vmul.f32 %v189_v27, %v144_v26 }
  0x6a   :  { %v191_v29 = vpop.eup %190 }
  0x6b   :  { %v135_v30 = vmul.f32 %v191_v29, %v124_v22 }
  0x6d   :  { %v147_v31 = vsub.f32 %v135_v30, %v146_v28 }
  0x6f   :  { %148 = vst [vmem:[#allocation7] sm:$0xff] %v147_v31 }
  0x70   :  { %247 = shalt.err (!%p244_p6)
}
  0x71   :  { %s248_s10 = scalar_lea.hbm %s322_s2, 128 }
  0x72   :  { %p249_p7 = scmp.ne.s32.totalorder %s322_s2, %s248_s10  ;;  %p252_p8 = scmp.lt.u32.totalorder %s248_s10, %s322_s2 }
  0x74   :  { %p254_p9 = pnand %p252_p8, %p249_p7 }
  0x76   :  { %257 = shalt.err (!%p254_p9)
}
  0x77   :  { %158 = dma.vmem_to_hbm [thread:$0]  %s156_s6, 128, %s322_s2, [#allocation4]  }
  0x78   :  { %262 = dma.done.wait [#allocation4], 128  }
  0x79   :  { %263 = vsyncadd [#allocation4], 4294967168 }
  0x7a   :  { %162 = vsyncpa [#allocation3], 1 }
  0x7b   :  { %163 = vsyncpa [#allocation6], 1 }
  0x7c   :  { %164 = vsyncpa [#allocation4], 1 }

</bundles_post_ra>
